<compile_context>
chip_gen: v5e
topology: v5e:2x2
jax: 0.10.0
libtpu: 0.0.40
codegen_flags: <defaults>
</compile_context>

<pallas_src>
from collections import namedtuple
import functools

import jax
import jax.numpy as jnp
from jax.experimental import pallas as pl
from jax.experimental.pallas import tpu as pltpu

_LANES = 128
_MAX_TILE_M = 2048
_VMEM_LIMIT = 32 * 1024 * 1024   # explicit; actual working set is a few MiB
_EPS = 1e-5
_SLOPE = 0.1


def _round_up(x, m):
    return (x + m - 1) // m * m


def _tile_rows(m):
    tile_m = min(_MAX_TILE_M, _round_up(m, 128))
    return tile_m, _round_up(m, tile_m)


def _mosaic_params(*sems):
    return pltpu.CompilerParams(dimension_semantics=sems,
                                vmem_limit_bytes=_VMEM_LIMIT)


# ----------------------------------------------------------------------------
# Pallas kernels
# ----------------------------------------------------------------------------
def _fused_conv_bn_act_kernel(col_ref, w_ref, gb_ref, out_ref, sum_ref, ssq_ref,
                              *, inv_m, eps, slope):
    """Two-phase fused conv + batch-stat BN + LeakyReLU.

    grid = (2, num_m_tiles); phase 0 accumulates per-channel sum / sumsq of the
    conv output into VMEM scratch, phase 1 recomputes the matmul and applies the
    fused BN scale/shift + activation (single bf16 store)."""
    phase = pl.program_id(0)
    mi = pl.program_id(1)

    # bf16 operands, f32 accumulation on the MXU.  Recomputed in phase 1
    # (bit-identical); cheaper than round-tripping y through HBM.
    y = jnp.dot(col_ref[...], w_ref[...], preferred_element_type=jnp.float32)

    @pl.when((phase == 0) & (mi == 0))
    def _():
        sum_ref[...] = jnp.zeros_like(sum_ref)
        ssq_ref[...] = jnp.zeros_like(ssq_ref)

    @pl.when(phase == 0)
    def _():
        sum_ref[...] += jnp.sum(y, axis=0, keepdims=True)
        ssq_ref[...] += jnp.sum(y * y, axis=0, keepdims=True)

    @pl.when(phase == 1)
    def _():
        mean = sum_ref[...] * inv_m
        var = jnp.maximum(ssq_ref[...] * inv_m - mean * mean, 0.0)  # biased var (PyTorch)
        scale = gb_ref[0:1, :] * jax.lax.rsqrt(var + eps)
        shift = gb_ref[1:2, :] - mean * scale
        z = y * scale + shift
        z = jnp.where(z >= 0.0, z, slope * z)
        out_ref[...] = z.astype(out_ref.dtype)


def _channel_stats_kernel(x_ref, stats_ref):
    """Per-channel sum / sum-of-squares over all M tiles (standalone concat-BN)."""
    x = x_ref[...].astype(jnp.float32)

    @pl.when(pl.program_id(0) == 0)
    def _():
        stats_ref[...] = jnp.zeros_like(stats_ref)

    stats_ref[0:1, :] += jnp.sum(x, axis=0, keepdims=True)
    stats_ref[1:2, :] += jnp.sum(x * x, axis=0, keepdims=True)


def _conv_bias_sigmoid_kernel(col_ref, w_ref, b_ref, out_ref):
    """y = sigmoid(x @ w + b) — final 1x1 conv (exact sigmoid, f32)."""
    y = jnp.dot(col_ref[...], w_ref[...], preferred_element_type=jnp.float32)
    y = y + b_ref[0:1, :]
    out_ref[...] = 1.0 / (1.0 + jnp.exp(-y))


# ----------------------------------------------------------------------------
# JAX glue: im2col / upsample / concat (layout-only ops, fused by XLA)
# ----------------------------------------------------------------------------
def _im2col(x, ksize, stride, pad):
    """x: (N,H,W,C) -> bf16 col padded to (mp, kp), K ordering (ky, kx, c)."""
    n, h, w, c = x.shape
    ho = (h + 2 * pad - ksize) // stride + 1
    wo = (w + 2 * pad - ksize) // stride + 1
    m = n * ho * wo
    k = ksize * ksize * c
    kp = _round_up(k, 16)                 # bf16 sublane packing for the weight tile
    tile_m, mp = _tile_rows(m)

    xb = x.astype(jnp.bfloat16)
    xp = jnp.pad(xb, ((0, 0), (pad, pad), (pad, pad), (0, 0)))
    cols = [xp[:, ky:ky + stride * ho:stride, kx:kx + stride * wo:stride, :]
            for ky in range(ksize) for kx in range(ksize)]
    if kp > k:
        cols.append(jnp.zeros((n, ho, wo, kp - k), jnp.bfloat16))
    col = jnp.concatenate(cols, axis=-1).reshape(m, kp)
    if mp > m:
        col = jnp.pad(col, ((0, mp - m), (0, 0)))   # zero rows don't perturb stats
    return col, (n, ho, wo, m, k, kp, tile_m, mp)


def conv_bn_act(x, w, gamma, beta, *, stride=1, pad=1, eps=_EPS, slope=_SLOPE):
    """Conv (bias dropped — cancelled exactly by batch-stat BN) + BN + LeakyReLU.

    Single fused pallas_call (2-phase grid, stats in VMEM scratch, bf16 output)."""
    kh, kw, cin, cout = w.shape
    assert kh == kw and cout <= _LANES, "Cout must fit one 128-lane slab"
    col, (n, ho, wo, m, k, kp, tile_m, mp) = _im2col(x, kh, stride, pad)
    nm = mp // tile_m

    wmat = jnp.pad(w.reshape(k, cout).astype(jnp.bfloat16),
                   ((0, kp - k), (0, _LANES - cout)))
    gb = jnp.zeros((8, _LANES), jnp.float32)
    gb = gb.at[0, :cout].set(gamma).at[1, :cout].set(beta)

    kernel = functools.partial(_fused_conv_bn_act_kernel,
                               inv_m=1.0 / m, eps=eps, slope=slope)
    out = pl.pallas_call(
        kernel,
        out_shape=jax.ShapeDtypeStruct((mp, _LANES), jnp.bfloat16),
        grid=(2, nm),
        in_specs=[pl.BlockSpec((tile_m, kp), lambda p, i: (i, 0)),
                  pl.BlockSpec((kp, _LANES), lambda p, i: (0, 0)),
                  pl.BlockSpec((8, _LANES), lambda p, i: (0, 0))],
        # "park" on block 0 during phase 0 so unwritten blocks are never flushed.
        out_specs=pl.BlockSpec((tile_m, _LANES), lambda p, i: (i * p, 0)),
        scratch_shapes=[pltpu.VMEM((1, _LANES), jnp.float32),
                        pltpu.VMEM((1, _LANES), jnp.float32)],
        compiler_params=_mosaic_params("arbitrary", "arbitrary"),
    )(col, wmat, gb)
    return out[:m, :cout].reshape(n, ho, wo, cout)


def bn_scale_shift(x, gamma, beta, *, eps=_EPS):
    """Batch-stat BN reduced to a read-only Pallas stats pass.

    Returns per-channel (scale, shift); the caller folds the elementwise apply
    into the next conv's wrapper-side im2col (fused by XLA — no standalone
    normalize pass, no masked narrow-lane stores)."""
    n, h, w, c = x.shape
    m = n * h * w
    xf = x.reshape(m, c)
    tile_m, mp = _tile_rows(m)
    if mp > m:
        xf = jnp.pad(xf, ((0, mp - m), (0, 0)))

    stats = pl.pallas_call(
        _channel_stats_kernel,
        out_shape=jax.ShapeDtypeStruct((8, c), jnp.float32),
        grid=(mp // tile_m,),
        in_specs=[pl.BlockSpec((tile_m, c), lambda i: (i, 0))],
        out_specs=pl.BlockSpec((8, c), lambda i: (0, 0)),
        compiler_params=_mosaic_params("arbitrary"),
    )(xf)

    mean = stats[0] / m
    var = jnp.maximum(stats[1] / m - mean * mean, 0.0)
    scale = gamma * jax.lax.rsqrt(var + eps)
    shift = beta - mean * scale
    return scale, shift


def conv1x1_sigmoid(x, w, b):
    """Final 1x1 conv (with bias) + sigmoid, fused in one Pallas kernel."""
    kh, kw, cin, cout = w.shape
    col, (n, ho, wo, m, k, kp, tile_m, mp) = _im2col(x, kh, 1, 0)
    nm = mp // tile_m

    wmat = jnp.pad(w.reshape(k, cout).astype(jnp.bfloat16),
                   ((0, kp - k), (0, _LANES - cout)))
    bmat = jnp.zeros((8, _LANES), jnp.float32).at[0, :cout].set(b)

    out = pl.pallas_call(
        _conv_bias_sigmoid_kernel,
        out_shape=jax.ShapeDtypeStruct((mp, _LANES), jnp.float32),
        grid=(nm,),
        in_specs=[pl.BlockSpec((tile_m, kp), lambda i: (i, 0)),
                  pl.BlockSpec((kp, _LANES), lambda i: (0, 0)),
                  pl.BlockSpec((8, _LANES), lambda i: (0, 0))],
        out_specs=pl.BlockSpec((tile_m, _LANES), lambda i: (i, 0)),
        compiler_params=_mosaic_params("parallel"),
    )(col, wmat, bmat)
    return out[:m, :cout].reshape(n, ho, wo, cout)


def nearest_up2(x):
    # TODO(synk): fold this 2x nearest indexing into the following conv's im2col gather.
    return jnp.repeat(jnp.repeat(x, 2, axis=1), 2, axis=2)


def concat_crop(inputs):
    """Concat_layer(dim=1) semantics, on NHWC (channel last), with center crop."""
    th = min(t.shape[1] for t in inputs)
    tw = min(t.shape[2] for t in inputs)
    outs = []
    for t in inputs:
        dh = (t.shape[1] - th) // 2
        dw = (t.shape[2] - tw) // 2
        outs.append(t[:, dh:dh + th, dw:dw + tw, :])
    return jnp.concatenate(outs, axis=-1)


# ----------------------------------------------------------------------------
# Unet definition (deterministic synthetic `indi` + parameters)
# ----------------------------------------------------------------------------
EncUnit = namedtuple('EncUnit', 'features block_amount conv_type downsample_type')
DecUnit = namedtuple('DecUnit', 'features block_amount conv_type upsample_type')
Indi = namedtuple('Indi', 'level_amount encoder_units decoder_units')


def make_indi():
    # Small 2-level individual; decoder features equal across levels (the
    # reference __init__ implicitly requires this for channel consistency).
    return Indi(
        level_amount=2,
        encoder_units=[EncUnit(16, 1, 'conv3x3', 'stride_conv'),
                       EncUnit(32, 1, 'conv3x3', 'stride_conv')],
        decoder_units=[DecUnit(24, 1, 'conv3x3', 'nearest_conv'),
                       DecUnit(24, 1, 'conv3x3', 'nearest_conv')],
    )


def _conv_params(key, kh, kw, cin, cout):
    k1, k2 = jax.random.split(key)
    fan_in = kh * kw * cin
    w = jax.random.normal(k1, (kh, kw, cin, cout), jnp.float32) * jnp.sqrt(2.0 / fan_in)
    b = jax.random.normal(k2, (cout,), jnp.float32) * 0.01
    return {'w': w, 'b': b}    # biases of BN-followed convs are unused (exact cancellation)


def _bn_params(c):
    return {'gamma': jnp.ones((c,), jnp.float32), 'beta': jnp.zeros((c,), jnp.float32)}


def init_params(indi, in_channels, key):
    L = indi.level_amount
    keys = iter(jax.random.split(key, 256))
    params = {'dsl': [], 'enc': [], 'dec': [None] * L, 'usl': [None] * L,
              'concat_bn': [None] * L}
    for level in range(L):
        dsl_in = in_channels if level == 0 else indi.encoder_units[level - 1].features
        f = indi.encoder_units[level].features
        params['dsl'].append({**_conv_params(next(keys), 3, 3, dsl_in, f), **_bn_params(f)})
        blocks, cin = [], f
        for _ in range(indi.encoder_units[level].block_amount):
            blocks.append({**_conv_params(next(keys), 3, 3, cin, f), **_bn_params(f)})
            cin = f
        params['enc'].append(blocks)
    for level in range(L - 1, -1, -1):
        if level == L - 1:
            cin = indi.encoder_units[level].features
        else:
            cin = indi.encoder_units[level].features + indi.decoder_units[level].features
            params['concat_bn'][level] = _bn_params(cin)
        f = indi.decoder_units[level].features
        blocks, c = [], cin
        for _ in range(indi.decoder_units[level].block_amount):
            blocks.append({**_conv_params(next(keys), 3, 3, c, f), **_bn_params(f)})
            c = f
        params['dec'][level] = blocks
        params['usl'][level] = {**_conv_params(next(keys), 3, 3, f, f), **_bn_params(f)}
    params['conv_last'] = _conv_params(
        next(keys), 1, 1, indi.decoder_units[L - 1].features + in_channels, in_channels)
    return params


def unet_forward(x_nchw, params, indi):
    # layout: input/output NCHW (PyTorch), internal compute NHWC bf16.
    x = jnp.transpose(x_nchw, (0, 2, 3, 1)).astype(jnp.bfloat16)
    origin = x
    L = indi.level_amount

    enc_outs = [None] * L
    for level in range(L):
        p = params['dsl'][level]
        x = conv_bn_act(x, p['w'], p['gamma'], p['beta'], stride=2, pad=1)
        for bp in params['enc'][level]:
            x = conv_bn_act(x, bp['w'], bp['gamma'], bp['beta'])
        enc_outs[level] = x

    for level in range(L - 1, -1, -1):
        if level != L - 1:
            x = concat_crop([x, enc_outs[level]])
            cb = params['concat_bn'][level]
            scale, shift = bn_scale_shift(x, cb['gamma'], cb['beta'])
            # BN-apply folded into the next conv's im2col producer fusion (exact).
            x = (x.astype(jnp.float32) * scale + shift).astype(jnp.bfloat16)
        for cp in params['dec'][level]:
            x = conv_bn_act(x, cp['w'], cp['gamma'], cp['beta'])
        up = params['usl'][level]
        x = nearest_up2(x)
        x = conv_bn_act(x, up['w'], up['gamma'], up['beta'])

    x = concat_crop([x, origin])
    cl = params['conv_last']
    x = conv1x1_sigmoid(x, cl['w'], cl['b'])
    return jnp.transpose(x, (0, 3, 1, 2))


# ----------------------------------------------------------------------------
if __name__ == "__main__":
    key = jax.random.PRNGKey(0)
    kp_, kx_ = jax.random.split(key)

    indi = make_indi()
    in_channels = 3
    params = init_params(indi, in_channels, kp_)

    x = jax.random.uniform(kx_, (2, in_channels, 16, 16), jnp.float32)
    out = unet_forward(x, params, indi)
    out = jax.block_until_ready(out)

    assert out.shape == (2, in_channels, 16, 16), out.shape
    assert bool(jnp.all(jnp.isfinite(out)))
    assert bool(jnp.all((out >= 0.0) & (out <= 1.0)))  # sigmoid output range
    print("KERNEL_OK")
</pallas_src>

<mosaic_0001>
module attributes {stable_mosaic.version = 11 : i64} {
  func.func @_fused_conv_bn_act_kernel(%arg0: i32, %arg1: i32, %arg2: memref<128x32xbf16, #tpu.memory_space<vmem>>, %arg3: memref<32x128xbf16, #tpu.memory_space<vmem>>, %arg4: memref<8x128xf32, #tpu.memory_space<vmem>>, %arg5: memref<128x128xbf16, #tpu.memory_space<vmem>>, %arg6: memref<1x128xf32, #tpu.memory_space<vmem>>, %arg7: memref<1x128xf32, #tpu.memory_space<vmem>>) attributes {dimension_semantics = [#tpu.dimension_semantics<arbitrary>, #tpu.dimension_semantics<arbitrary>], iteration_bounds = array<i64: 2, 1>, scalar_prefetch = 0 : i64, scratch_operands = 2 : i64, tpu.core_type = #tpu.core_type<tc>, window_params = [{transform_indices = @transform_0, window_bounds = array<i64: 128, 32>}, {pipeline_mode = #tpu.pipeline_mode<synchronous>, transform_indices = @transform_1, window_bounds = array<i64: 32, 128>}, {pipeline_mode = #tpu.pipeline_mode<synchronous>, transform_indices = @transform_2, window_bounds = array<i64: 8, 128>}, {transform_indices = @transform_3, window_bounds = array<i64: 128, 128>}]} {
    %c0 = arith.constant 0 : index
    %c0_0 = arith.constant 0 : index
    %0 = vector.load %arg2[%c0, %c0_0] : memref<128x32xbf16, #tpu.memory_space<vmem>>, vector<128x32xbf16>
    %c0_1 = arith.constant 0 : index
    %c0_2 = arith.constant 0 : index
    %1 = vector.load %arg3[%c0_1, %c0_2] : memref<32x128xbf16, #tpu.memory_space<vmem>>, vector<32x128xbf16>
    %cst = arith.constant dense<0.000000e+00> : vector<128x128xf32>
    %2 = tpu.matmul %0, %1, %cst {dimension_numbers = #tpu.dot_dimension_numbers<[1], [0], [0], [1], [0, 0, 1, 1], [], []>} : vector<128x32xbf16>, vector<32x128xbf16>, vector<128x128xf32> -> vector<128x128xf32>
    %c0_i32 = arith.constant 0 : i32
    %3 = arith.cmpi eq, %arg0, %c0_i32 : i32
    %c0_i32_3 = arith.constant 0 : i32
    %4 = arith.cmpi eq, %arg1, %c0_i32_3 : i32
    %5 = arith.andi %3, %4 : i1
    %6 = arith.extui %5 : i1 to i32
    %c0_i32_4 = arith.constant 0 : i32
    %7 = arith.cmpi ne, %6, %c0_i32_4 : i32
    scf.if %7 {
      %cst_8 = arith.constant 0.000000e+00 : f32
      %14 = vector.broadcast %cst_8 : f32 to vector<1x128xf32>
      %c0_9 = arith.constant 0 : index
      %c0_10 = arith.constant 0 : index
      %15 = vector.load %arg6[%c0_9, %c0_10] : memref<1x128xf32, #tpu.memory_space<vmem>>, vector<1x128xf32>
      tpu.vector_store %arg6[%c0_9, %c0_10], %14 {strides = array<i32>} : memref<1x128xf32, #tpu.memory_space<vmem>>, vector<1x128xf32>,
      %cst_11 = arith.constant 0.000000e+00 : f32
      %16 = vector.broadcast %cst_11 : f32 to vector<1x128xf32>
      %c0_12 = arith.constant 0 : index
      %c0_13 = arith.constant 0 : index
      %17 = vector.load %arg7[%c0_12, %c0_13] : memref<1x128xf32, #tpu.memory_space<vmem>>, vector<1x128xf32>
      tpu.vector_store %arg7[%c0_12, %c0_13], %16 {strides = array<i32>} : memref<1x128xf32, #tpu.memory_space<vmem>>, vector<1x128xf32>,
    } else {
    }
    %c0_i32_5 = arith.constant 0 : i32
    %8 = arith.cmpi eq, %arg0, %c0_i32_5 : i32
    %9 = arith.extui %8 : i1 to i32
    %c0_i32_6 = arith.constant 0 : i32
    %10 = arith.cmpi ne, %9, %c0_i32_6 : i32
    scf.if %10 {
      %c0_8 = arith.constant 0 : index
      %c0_9 = arith.constant 0 : index
      %14 = vector.load %arg6[%c0_8, %c0_9] : memref<1x128xf32, #tpu.memory_space<vmem>>, vector<1x128xf32>
      %cst_10 = arith.constant dense<0.000000e+00> : vector<128xf32>
      %15 = vector.multi_reduction <add>, %2, %cst_10 [0] : vector<128x128xf32> to vector<128xf32>
      %16 = vector.shape_cast %15 : vector<128xf32> to vector<1x128xf32>
      %17 = arith.addf %14, %16 : vector<1x128xf32>
      %c0_11 = arith.constant 0 : index
      %c0_12 = arith.constant 0 : index
      %18 = vector.load %arg6[%c0_11, %c0_12] : memref<1x128xf32, #tpu.memory_space<vmem>>, vector<1x128xf32>
      tpu.vector_store %arg6[%c0_11, %c0_12], %17 {strides = array<i32>} : memref<1x128xf32, #tpu.memory_space<vmem>>, vector<1x128xf32>,
      %c0_13 = arith.constant 0 : index
      %c0_14 = arith.constant 0 : index
      %19 = vector.load %arg7[%c0_13, %c0_14] : memref<1x128xf32, #tpu.memory_space<vmem>>, vector<1x128xf32>
      %20 = arith.mulf %2, %2 : vector<128x128xf32>
      %cst_15 = arith.constant dense<0.000000e+00> : vector<128xf32>
      %21 = vector.multi_reduction <add>, %20, %cst_15 [0] : vector<128x128xf32> to vector<128xf32>
      %22 = vector.shape_cast %21 : vector<128xf32> to vector<1x128xf32>
      %23 = arith.addf %19, %22 : vector<1x128xf32>
      %c0_16 = arith.constant 0 : index
      %c0_17 = arith.constant 0 : index
      %24 = vector.load %arg7[%c0_16, %c0_17] : memref<1x128xf32, #tpu.memory_space<vmem>>, vector<1x128xf32>
      tpu.vector_store %arg7[%c0_16, %c0_17], %23 {strides = array<i32>} : memref<1x128xf32, #tpu.memory_space<vmem>>, vector<1x128xf32>,
    } else {
    }
    %c1_i32 = arith.constant 1 : i32
    %11 = arith.cmpi eq, %arg0, %c1_i32 : i32
    %12 = arith.extui %11 : i1 to i32
    %c0_i32_7 = arith.constant 0 : i32
    %13 = arith.cmpi ne, %12, %c0_i32_7 : i32
    scf.if %13 {
      %c0_8 = arith.constant 0 : index
      %c0_9 = arith.constant 0 : index
      %14 = vector.load %arg6[%c0_8, %c0_9] : memref<1x128xf32, #tpu.memory_space<vmem>>, vector<1x128xf32>
      %cst_10 = arith.constant 7.812500e-03 : f32
      %15 = vector.broadcast %cst_10 : f32 to vector<1x128xf32>
      %16 = arith.mulf %14, %15 : vector<1x128xf32>
      %c0_11 = arith.constant 0 : index
      %c0_12 = arith.constant 0 : index
      %17 = vector.load %arg7[%c0_11, %c0_12] : memref<1x128xf32, #tpu.memory_space<vmem>>, vector<1x128xf32>
      %cst_13 = arith.constant 7.812500e-03 : f32
      %18 = vector.broadcast %cst_13 : f32 to vector<1x128xf32>
      %19 = arith.mulf %17, %18 : vector<1x128xf32>
      %20 = arith.mulf %16, %16 : vector<1x128xf32>
      %21 = arith.subf %19, %20 : vector<1x128xf32>
      %cst_14 = arith.constant 0.000000e+00 : f32
      %22 = vector.broadcast %cst_14 : f32 to vector<1x128xf32>
      %23 = arith.maximumf %21, %22 : vector<1x128xf32>
      %c0_15 = arith.constant 0 : index
      %c0_16 = arith.constant 0 : index
      %24 = vector.load %arg4[%c0_15, %c0_16] : memref<8x128xf32, #tpu.memory_space<vmem>>, vector<1x128xf32>
      %cst_17 = arith.constant 9.99999974E-6 : f32
      %25 = vector.broadcast %cst_17 : f32 to vector<1x128xf32>
      %26 = arith.addf %23, %25 : vector<1x128xf32>
      %27 = math.rsqrt %26 : vector<1x128xf32>
      %28 = arith.mulf %24, %27 : vector<1x128xf32>
      %c1 = arith.constant 1 : index
      %c0_18 = arith.constant 0 : index
      %29 = vector.load %arg4[%c1, %c0_18] : memref<8x128xf32, #tpu.memory_space<vmem>>, vector<1x128xf32>
      %30 = arith.mulf %16, %28 : vector<1x128xf32>
      %31 = arith.subf %29, %30 : vector<1x128xf32>
      %32 = vector.broadcast %28 : vector<1x128xf32> to vector<128x128xf32>
      %33 = arith.mulf %2, %32 : vector<128x128xf32>
      %34 = vector.broadcast %31 : vector<1x128xf32> to vector<128x128xf32>
      %35 = arith.addf %33, %34 : vector<128x128xf32>
      %cst_19 = arith.constant 0.000000e+00 : f32
      %36 = vector.broadcast %cst_19 : f32 to vector<128x128xf32>
      %37 = arith.cmpf oge, %35, %36 : vector<128x128xf32>
      %cst_20 = arith.constant 1.000000e-01 : f32
      %38 = vector.broadcast %cst_20 : f32 to vector<128x128xf32>
      %39 = arith.mulf %38, %35 : vector<128x128xf32>
      %40 = arith.select %37, %35, %39 : vector<128x128xi1>, vector<128x128xf32>
      %41 = arith.truncf %40 : vector<128x128xf32> to vector<128x128xbf16>
      %c0_21 = arith.constant 0 : index
      %c0_22 = arith.constant 0 : index
      %42 = vector.load %arg5[%c0_21, %c0_22] : memref<128x128xbf16, #tpu.memory_space<vmem>>, vector<128x128xbf16>
      tpu.vector_store %arg5[%c0_21, %c0_22], %41 {strides = array<i32>} : memref<128x128xbf16, #tpu.memory_space<vmem>>, vector<128x128xbf16>,
    } else {
    }
    return
  }
  func.func @transform_0(%arg0: i32, %arg1: i32) -> (i32, i32) {
    %c0_i32 = arith.constant 0 : i32
    %c0_i32_0 = arith.constant 0 : i32
    return %arg1, %c0_i32 : i32, i32
  }
  func.func @transform_1(%arg0: i32, %arg1: i32) -> (i32, i32) {
    %c0_i32 = arith.constant 0 : i32
    %c0_i32_0 = arith.constant 0 : i32
    %c0_i32_1 = arith.constant 0 : i32
    return %c0_i32, %c0_i32_0 : i32, i32
  }
  func.func @transform_2(%arg0: i32, %arg1: i32) -> (i32, i32) {
    %c0_i32 = arith.constant 0 : i32
    %c0_i32_0 = arith.constant 0 : i32
    %c0_i32_1 = arith.constant 0 : i32
    return %c0_i32, %c0_i32_0 : i32, i32
  }
  func.func @transform_3(%arg0: i32, %arg1: i32) -> (i32, i32) {
    %0 = arith.muli %arg1, %arg0 : i32
    %c0_i32 = arith.constant 0 : i32
    %c0_i32_0 = arith.constant 0 : i32
    return %0, %c0_i32 : i32, i32
  }
}

</mosaic_0001>

<bundles_post_ra>
// kernel: tpu_custom_call.1
= control target key start
LH: loop header
LB: loop body
LE: loop exit
PB: predicated region body
PF: predicated region fallthrough
CT: control target
= control target key end

     0   :  { %8 = vsyncpa [#allocation5], 0  ;;  %s1105_s0 = inlined_call_operand.vmem [shape: bf16[128,32], index: 0, kind: input, shape index: {}]   ;;  %s1106_s1 = inlined_call_operand.vmem [shape: bf16[32,128], index: 1, kind: input, shape index: {}]   ;;  %s1107_s2 = inlined_call_operand.vmem [shape: f32[8,128], index: 2, kind: input, shape index: {}]   ;;  %s1108_s3 = inlined_call_operand.hbm [shape: bf16[128,128], index: 3, kind: output, shape index: {}]  }
   0x1   :  { %10 = vsyncpa [#allocation5 + $0x1], 0  ;;  %s885_s12 = smov 0   ;;  %s887_s13 = smov 0  }
   0x2   :  { %s889_s14 = smov 0  }
   0x3 LB: > { %s640_s15 = sadd.s32 4294967295, %s859_s14   ;;  %s641_s16 = sadd.s32 4294967294, %s859_s14   ;;  %s859_s14 = sphi %s889_s14, %s16_s14   ;;  %s855_s13 = sphi %s887_s13, %s1110_s13   ;;  %s851_s12 = sphi %s885_s12, %s1109_s12  }
   0x4   : > { %s28_s17 = sadd.s32 1, %s855_s13  ;;  %p644_p0 = scmp.ge.s32.totalorder %s859_s14, 1 }
   0x5   : > { %p30_p1 = scmp.ge.s32.totalorder %s28_s17, 2  ;;  %p155_p2 = scmp.lt.s32.totalorder %s859_s14, 3 }
   0x7   : > { %s1112_s17 = smov (%p30_p1, %s28_s17), 0  ;;  %p156_p3 = pnand %p644_p0, %p155_p2 }
   0x8   : > { %p334_p4 = scmp.eq.s32.totalorder (!%p156_p3), %s851_s12, 0 }
   0x9   : > { %159 = sbr.rel (%p156_p3) target bundleno = 306 (0x132), region = 32 }
   0xe   : > { %v709_v0 = vld [vmem:[%s1106_s1 + $0x8] sm:$0xff]  ;;  %v708_v1 = vld [vmem:[%s1106_s1] sm:$0xff]  ;;  %v702_v3 = vld [vmem:[%s1105_s0 + $0x10] sm:$0xff]  ;;  %vm260_vm0 = vcmask 261120   ;;  %v861_v26 = vmov (%p334_p4), 0.0  }
   0xf   : > { %291 = vmatpush.bf16.msra.mxu0 %v709_v0  ;;  %758 = vmatpush.bf16.msra.mxu1 %v709_v0  ;;  %v700_v2 = vld [vmem:[%s1105_s0] sm:$0xff]  ;;  %v706_v5 = vld [vmem:[%s1105_s0 + $0x30] sm:$0xff]  ;;  %v701_v6 = vld [vmem:[%s1105_s0 + $0x8] sm:$0xff]  ;;  %340 = vst [vmem:[#allocation2] sm:$0x1] (%p334_p4), %v861_v26 }
  0x10   : > { %759 = vmatpush.bf16.msra.mxu2 %v709_v0  ;;  %760 = vmatpush.bf16.msra.mxu3 %v709_v0  ;;  %v704_v4 = vld [vmem:[%s1105_s0 + $0x20] sm:$0xff]  ;;  %v703_v7 = vld [vmem:[%s1105_s0 + $0x18] sm:$0xff]  ;;  %v705_v8 = vld [vmem:[%s1105_s0 + $0x28] sm:$0xff]  ;;  %341 = vst [vmem:[#allocation3] sm:$0x1] (%p334_p4), %v861_v26 }
  0x11   : > { %v707_v9 = vld [vmem:[%s1105_s0 + $0x38] sm:$0xff] }
  0x13   : > { %292 = vmatpush.bf16.msra.mxu0 %v708_v1  ;;  %761 = vmatpush.bf16.msra.mxu1 %v708_v1 }
  0x14   : > { %762 = vmatpush.bf16.msra.mxu2 %v708_v1  ;;  %763 = vmatpush.bf16.msra.mxu3 %v708_v1 }
  0x16   : > { %685 = vmatmul.msk.bf16.vlgmr.msra.gmra.mxu0 %vm260_vm0, %v700_v2  ;;  %687 = vmatmul.msk.bf16.vlgmr.msra.gmra.mxu1 %vm260_vm0, %v702_v3 }
  0x17   : > { %689 = vmatmul.msk.bf16.vlgmr.msra.gmra.mxu2 %vm260_vm0, %v704_v4  ;;  %691 = vmatmul.msk.bf16.vlgmr.msra.gmra.mxu3 %vm260_vm0, %v706_v5 }
  0x26   : > { %686 = vmatmul.msk.bf16.gmra.mxu0 %vm260_vm0, %v701_v6  ;;  %688 = vmatmul.msk.bf16.gmra.mxu1 %vm260_vm0, %v703_v7 }
  0x27   : > { %690 = vmatmul.msk.bf16.gmra.mxu2 %vm260_vm0, %v705_v8  ;;  %692 = vmatmul.msk.bf16.gmra.mxu3 %vm260_vm0, %v707_v9 }
  0x93   : > { %v946_v10 = vpop.f32.mrf.mxu0  ;;  %v948_v11 = vpop.f32.mrf.mxu1 }
  0x9a   : > { %v950_v12 = vpop.f32.mrf.mxu2  ;;  %v952_v13 = vpop.f32.mrf.mxu3 }
  0x9b   : > { %v954_v14 = vpop.f32.mrf.mxu0  ;;  %v956_v15 = vpop.f32.mrf.mxu1 }
  0xa2   : > { %v958_v16 = vpop.f32.mrf.mxu2  ;;  %v960_v17 = vpop.f32.mrf.mxu3 }
  0xa3   : > { %v962_v18 = vpop.f32.mrf.mxu0  ;;  %v964_v19 = vpop.f32.mrf.mxu1 }
  0xaa   : > { %v966_v20 = vpop.f32.mrf.mxu2  ;;  %v968_v21 = vpop.f32.mrf.mxu3 }
  0xab   : > { %v970_v22 = vpop.f32.mrf.mxu0  ;;  %v972_v23 = vpop.f32.mrf.mxu1 }
  0xae   : > { %339 = sbr.rel (!%p334_p4) target bundleno = 179 (0xb3), region = 36 }
  0xb2   : > { %v974_v24 = vpop.f32.mrf.mxu2  ;;  %v976_v25 = vpop.f32.mrf.mxu3 }
  0xb3 PF: > { %p694_p5 = scmp.ne.s32.totalorder %s851_s12, 0 }
  0xb5   : > { %344 = sbr.rel (%p694_p5) target bundleno = 233 (0xe9), region = 40 }
  0xba   : > { %v346_v27 = vadd.f32 %v954_v14, %v946_v10  ;;  %v370_v28 = vmul.f32 %v946_v10, %v946_v10  ;;  %v371_v29 = vmul.f32 %v954_v14, %v954_v14  ;;  %v372_v31 = vmul.f32 %v962_v18, %v962_v18 }
  0xbb   : > { %v373_v33 = vmul.f32 %v970_v22, %v970_v22  ;;  %v374_v36 = vmul.f32 %v948_v11, %v948_v11  ;;  %v375_v39 = vmul.f32 %v956_v15, %v956_v15  ;;  %v376_v42 = vmul.f32 %v964_v19, %v964_v19 }
  0xbc   : > { %v347_v30 = vadd.f32 %v346_v27, %v962_v18  ;;  %v386_v34 = vadd.f32 %v371_v29, %v370_v28  ;;  %v377_v45 = vmul.f32 %v972_v23, %v972_v23  ;;  %v378_v48 = vmul.f32 %v950_v12, %v950_v12 }
  0xbd   : > { %v379_v51 = vmul.f32 %v958_v16, %v958_v16  ;;  %v380_v54 = vmul.f32 %v966_v20, %v966_v20  ;;  %v381_v57 = vmul.f32 %v974_v24, %v974_v24  ;;  %v382_v60 = vmul.f32 %v952_v13, %v952_v13 }
  0xbe   : > { %v348_v32 = vadd.f32 %v347_v30, %v970_v22  ;;  %v387_v37 = vadd.f32 %v386_v34, %v372_v31  ;;  %v383_v63 = vmul.f32 %v960_v17, %v960_v17  ;;  %v384_v2 = vmul.f32 %v968_v21, %v968_v21 }
  0xbf   : > { %v385_v5 = vmul.f32 %v976_v25, %v976_v25 }
  0xc0   : > { %v349_v35 = vadd.f32 %v348_v32, %v948_v11  ;;  %v388_v40 = vadd.f32 %v387_v37, %v373_v33  ;;  %v345_v33 = vld [vmem:[#allocation2] sm:$0x1] }
  0xc2   : > { %v350_v38 = vadd.f32 %v349_v35, %v956_v15  ;;  %v389_v43 = vadd.f32 %v388_v40, %v374_v36 }
  0xc4   : > { %v351_v41 = vadd.f32 %v350_v38, %v964_v19  ;;  %v390_v46 = vadd.f32 %v389_v43, %v375_v39  ;;  %v369_v38 = vld [vmem:[#allocation3] sm:$0x1] }
  0xc6   : > { %v352_v44 = vadd.f32 %v351_v41, %v972_v23  ;;  %v391_v49 = vadd.f32 %v390_v46, %v376_v42 }
  0xc8   : > { %v353_v47 = vadd.f32 %v352_v44, %v950_v12  ;;  %v392_v52 = vadd.f32 %v391_v49, %v377_v45 }
  0xca   : > { %v354_v50 = vadd.f32 %v353_v47, %v958_v16  ;;  %v393_v55 = vadd.f32 %v392_v52, %v378_v48 }
  0xcc   : > { %v355_v53 = vadd.f32 %v354_v50, %v966_v20  ;;  %v394_v58 = vadd.f32 %v393_v55, %v379_v51 }
  0xce   : > { %v356_v56 = vadd.f32 %v355_v53, %v974_v24  ;;  %v395_v61 = vadd.f32 %v394_v58, %v380_v54 }
  0xd0   : > { %v357_v59 = vadd.f32 %v356_v56, %v952_v13  ;;  %v396_v0 = vadd.f32 %v395_v61, %v381_v57 }
  0xd2   : > { %v358_v62 = vadd.f32 %v357_v59, %v960_v17  ;;  %v397_v3 = vadd.f32 %v396_v0, %v382_v60 }
  0xd4   : > { %v359_v1 = vadd.f32 %v358_v62, %v968_v21  ;;  %v398_v6 = vadd.f32 %v397_v3, %v383_v63 }
  0xd6   : > { %v360_v4 = vadd.f32 %v359_v1, %v976_v25  ;;  %v399_v8 = vadd.f32 %v398_v6, %v384_v2 }
  0xd8   : > { %v361_v7 = vrot.slane %v360_v4, 4  ;;  %v400_v26 = vadd.f32 %v399_v8, %v385_v5 }
  0xda   : > { %v362_v9 = vadd.f32 %v361_v7, %v360_v4  ;;  %v401_v28 = vrot.slane %v400_v26, 4 }
  0xdc   : > { %v363_v27 = vrot.slane %v362_v9, 2  ;;  %v402_v30 = vadd.f32 %v401_v28, %v400_v26 }
  0xde   : > { %v364_v29 = vadd.f32 %v363_v27, %v362_v9  ;;  %v403_v32 = vrot.slane %v402_v30, 2 }
  0xe0   : > { %v365_v31 = vrot.slane %v364_v29, 1  ;;  %v404_v35 = vadd.f32 %v403_v32, %v402_v30 }
  0xe2   : > { %v366_v34 = vadd.f32 %v365_v31, %v364_v29  ;;  %v405_v37 = vrot.slane %v404_v35, 1 }
  0xe4   : > { %v367_v36 = vadd.f32 %v366_v34, %v345_v33  ;;  %v406_v39 = vadd.f32 %v405_v37, %v404_v35 }
  0xe6   : > { %368 = vst [vmem:[#allocation2] sm:$0x1] %v367_v36  ;;  %v407_v40 = vadd.f32 %v406_v39, %v369_v38 }
  0xe8   : > { %408 = vst [vmem:[#allocation3] sm:$0x1] %v407_v40 }
  0xe9 PF: > { %p695_p6 = scmp.ne.s32.totalorder %s851_s12, 1 }
  0xeb   : > { %412 = sbr.rel (%p695_p6) target bundleno = 302 (0x12e), region = 44 }
  0xf0   : > { %v413_v41 = vld [vmem:[#allocation2] sm:$0x1]  ;;  %v415_v42 = vld [vmem:[#allocation3] sm:$0x1] }
  0xf1   : > { %v414_v43 = vmul.f32 0.0078125, %v413_v41  ;;  %v416_v44 = vmul.f32 0.0078125, %v415_v42  ;;  %v420_v54 = vld [vmem:[%s1107_s2] sm:$0x1]  ;;  %v433_v58 = vld [vmem:[%s1107_s2 + $0x1] sm:$0x1] }
  0xf3   : > { %v417_v45 = vmul.f32 %v414_v43, %v414_v43 }
  0xf5   : > { %v418_v46 = vsub.f32 %v416_v44, %v417_v45 }
  0xf7   : > { %v419_v47 = vmax.f32 %v418_v46, 0.0 }
  0xf9   : > { %v421_v48 = vadd.f32 1e-05, %v419_v47 }
  0xfb   : > { %803 = vrsqrt.f32 %v421_v48  ;;  %vm428_vm1 = vweird.f32 %v421_v48 }
 0x101   : > { %v804_v49 = vpop.eup %803 }
 0x102   : > { %v423_v50 = vmul.f32 %v804_v49, %v421_v48  ;;  %vm429_vm2 = vweird.f32 %v804_v49 }
 0x103   : > { %vm430_vm3 = vmor %vm428_vm1, %vm429_vm2 }
 0x104   : > { %v424_v51 = vmul.f32 %v804_v49, %v423_v50 }
 0x106   : > { %v425_v52 = vmul.f32 0.5, %v424_v51 }
 0x108   : > { %v426_v53 = vsub.f32 1.5, %v425_v52 }
 0x10a   : > { %v427_v55 = vmul.f32 %v804_v49, %v426_v53 }
 0x10c   : > { %v431_v56 = vsel %vm430_vm3, %v804_v49, %v427_v55 }
 0x10d   : > { %v432_v57 = vmul.f32 %v431_v56, %v420_v54 }
 0x10f   : > { %v434_v59 = vmul.f32 %v432_v57, %v414_v43  ;;  %v1036_v60 = vperm.slane %v432_v57, 0 }
 0x111   : > { %v435_v61 = vsub.f32 %v433_v58, %v434_v59  ;;  %v437_v62 = vmul.f32 %v1036_v60, %v946_v10  ;;  %v438_v63 = vmul.f32 %v1036_v60, %v954_v14  ;;  %v439_v0 = vmul.f32 %v1036_v60, %v962_v18 }
 0x112   : > { %v440_v1 = vmul.f32 %v1036_v60, %v970_v22  ;;  %v441_v2 = vmul.f32 %v1036_v60, %v948_v11  ;;  %v442_v3 = vmul.f32 %v1036_v60, %v956_v15  ;;  %v443_v4 = vmul.f32 %v1036_v60, %v964_v19 }
 0x113   : > { %v1052_v5 = vperm.slane %v435_v61, 0  ;;  %v444_v10 = vmul.f32 %v1036_v60, %v972_v23  ;;  %v445_v14 = vmul.f32 %v1036_v60, %v950_v12  ;;  %v446_v18 = vmul.f32 %v1036_v60, %v958_v16 }
 0x114   : > { %v447_v11 = vmul.f32 %v1036_v60, %v966_v20  ;;  %v448_v15 = vmul.f32 %v1036_v60, %v974_v24  ;;  %v449_v19 = vmul.f32 %v1036_v60, %v952_v13  ;;  %v450_v22 = vmul.f32 %v1036_v60, %v960_v17 }
 0x115   : > { %v454_v23 = vadd.f32 %v1052_v5, %v437_v62  ;;  %v455_v6 = vadd.f32 %v1052_v5, %v438_v63  ;;  %v456_v12 = vadd.f32 %v1052_v5, %v439_v0  ;;  %v457_v16 = vadd.f32 %v1052_v5, %v440_v1 }
 0x116   : > { %v458_v7 = vadd.f32 %v1052_v5, %v441_v2  ;;  %v459_v20 = vadd.f32 %v1052_v5, %v442_v3  ;;  %v460_v24 = vadd.f32 %v1052_v5, %v443_v4  ;;  %v461_v8 = vadd.f32 %v1052_v5, %v444_v10 }
 0x117   : > { %vm470_vm4 = vcmp.ge.f32.partialorder %v454_v23, 0.0  ;;  %vm471_vm5 = vcmp.ge.f32.partialorder %v455_v6, 0.0  ;;  %v486_v13 = vmul.f32 0.1, %v454_v23  ;;  %v487_v17 = vmul.f32 0.1, %v455_v6 }
 0x118   : > { %vm472_vm6 = vcmp.ge.f32.partialorder %v456_v12, 0.0  ;;  %vm473_vm7 = vcmp.ge.f32.partialorder %v457_v16, 0.0  ;;  %v488_v9 = vmul.f32 0.1, %v456_v12  ;;  %v489_v26 = vmul.f32 0.1, %v457_v16 }
 0x119   : > { %v502_v27 = vsel %vm470_vm4, %v454_v23, %v486_v13  ;;  %v503_v28 = vsel %vm471_vm5, %v455_v6, %v487_v17  ;;  %vm474_vm8 = vcmp.ge.f32.partialorder %v458_v7, 0.0  ;;  %vm475_vm9 = vcmp.ge.f32.partialorder %v459_v20, 0.0 }
 0x11a   : > { %v714_v29 = vpack.c.bf16 %v503_v28, %v502_v27  ;;  %v504_v30 = vsel %vm472_vm6, %v456_v12, %v488_v9  ;;  %v505_v31 = vsel %vm473_vm7, %v457_v16, %v489_v26  ;;  %v490_v32 = vmul.f32 0.1, %v458_v7 }
 0x11b   : > { %v719_v33 = vpack.c.bf16 %v505_v31, %v504_v30  ;;  %v491_v34 = vmul.f32 0.1, %v459_v20  ;;  %vm476_vm10 = vcmp.ge.f32.partialorder %v460_v24, 0.0  ;;  %vm477_vm11 = vcmp.ge.f32.partialorder %v461_v8, 0.0 }
 0x11c   : > { %715 = vst [vmem:[#allocation4] sm:$0xff] %v714_v29   ;;  %v506_v35 = vsel %vm474_vm8, %v458_v7, %v490_v32  ;;  %v492_v36 = vmul.f32 0.1, %v460_v24  ;;  %v493_v37 = vmul.f32 0.1, %v461_v8  ;;  %v462_v38 = vadd.f32 %v1052_v5, %v445_v14 }
 0x11d   : > { %751 = vst [vmem:[#allocation4 + $0x8] sm:$0xff] %v719_v33   ;;  %v507_v39 = vsel %vm475_vm9, %v459_v20, %v491_v34  ;;  %v463_v40 = vadd.f32 %v1052_v5, %v446_v18  ;;  %v464_v41 = vadd.f32 %v1052_v5, %v447_v11  ;;  %v465_v42 = vadd.f32 %v1052_v5, %v448_v15 }
 0x11e   : > { %v724_v43 = vpack.c.bf16 %v507_v39, %v506_v35  ;;  %v508_v44 = vsel %vm476_vm10, %v460_v24, %v492_v36  ;;  %v509_v45 = vsel %vm477_vm11, %v461_v8, %v493_v37  ;;  %vm478_vm12 = vcmp.ge.f32.partialorder %v462_v38, 0.0 }
 0x11f   : > { %v729_v46 = vpack.c.bf16 %v509_v45, %v508_v44  ;;  %vm479_vm13 = vcmp.ge.f32.partialorder %v463_v40, 0.0  ;;  %v494_v47 = vmul.f32 0.1, %v462_v38  ;;  %v495_v48 = vmul.f32 0.1, %v463_v40 }
 0x120   : > { %752 = vst [vmem:[#allocation4 + $0x10] sm:$0xff] %v724_v43   ;;  %vm480_vm14 = vcmp.ge.f32.partialorder %v464_v41, 0.0  ;;  %vm481_vm15 = vcmp.ge.f32.partialorder %v465_v42, 0.0  ;;  %v496_v49 = vmul.f32 0.1, %v464_v41  ;;  %v466_v50 = vadd.f32 %v1052_v5, %v449_v19 }
 0x121   : > { %753 = vst [vmem:[#allocation4 + $0x18] sm:$0xff] %v729_v46   ;;  %v510_v51 = vsel %vm478_vm12, %v462_v38, %v494_v47  ;;  %v511_v52 = vsel %vm479_vm13, %v463_v40, %v495_v48  ;;  %v497_v53 = vmul.f32 0.1, %v465_v42  ;;  %v467_v54 = vadd.f32 %v1052_v5, %v450_v22 }
 0x122   : > { %v734_v55 = vpack.c.bf16 %v511_v52, %v510_v51  ;;  %v512_v56 = vsel %vm480_vm14, %v464_v41, %v496_v49  ;;  %vm482_vm0 = vcmp.ge.f32.partialorder %v466_v50, 0.0  ;;  %v498_v57 = vmul.f32 0.1, %v466_v50 }
 0x123   : > { %v513_v58 = vsel %vm481_vm15, %v465_v42, %v497_v53  ;;  %vm483_vm1 = vcmp.ge.f32.partialorder %v467_v54, 0.0  ;;  %v499_v59 = vmul.f32 0.1, %v467_v54  ;;  %v451_v61 = vmul.f32 %v1036_v60, %v968_v21 }
 0x124   : > { %754 = vst [vmem:[#allocation4 + $0x20] sm:$0xff] %v734_v55   ;;  %v739_v62 = vpack.c.bf16 %v513_v58, %v512_v56  ;;  %v514_v63 = vsel %vm482_vm0, %v466_v50, %v498_v57  ;;  %v452_v0 = vmul.f32 %v1036_v60, %v976_v25 }
 0x125   : > { %v515_v1 = vsel %vm483_vm1, %v467_v54, %v499_v59  ;;  %v468_v2 = vadd.f32 %v1052_v5, %v451_v61 }
 0x126   : > { %755 = vst [vmem:[#allocation4 + $0x28] sm:$0xff] %v739_v62   ;;  %v744_v3 = vpack.c.bf16 %v515_v1, %v514_v63  ;;  %v469_v4 = vadd.f32 %v1052_v5, %v452_v0 }
 0x127   : > { %vm484_vm2 = vcmp.ge.f32.partialorder %v468_v2, 0.0  ;;  %v500_v10 = vmul.f32 0.1, %v468_v2 }
 0x128   : > { %756 = vst [vmem:[#allocation4 + $0x30] sm:$0xff] %v744_v3   ;;  %vm485_vm3 = vcmp.ge.f32.partialorder %v469_v4, 0.0  ;;  %v501_v14 = vmul.f32 0.1, %v469_v4 }
 0x129   : > { %v516_v18 = vsel %vm484_vm2, %v468_v2, %v500_v10 }
 0x12a   : > { %v517_v21 = vsel %vm485_vm3, %v469_v4, %v501_v14 }
 0x12b   : > { %v749_v11 = vpack.c.bf16 %v517_v21, %v516_v18 }
 0x12d   : > { %757 = vst [vmem:[#allocation4 + $0x38] sm:$0xff] %v749_v11  }
 0x12e PF: > { %p772_p7 = scmp.eq.s32.totalorder %s640_s15, 1  ;;  %s566_s22 = sshll.u32 %s1108_s3, 4  ;;  %s567_s22 = int_to_ptr.hbm [resolvable:$true] %s566_s22 }
 0x12f   : > { %s862_s23 = smov [#allocation4]   ;;  %s863_s25 = smov 64  }
 0x130   : > { %s564_s24 = sshll.u32 %s862_s23, 4  ;;  %s864_s26 = smov 4   ;;  %s565_s24 = int_to_ptr.vmem [resolvable:$true] %s564_s24 }
 0x131   : > { %765 = dma.vmem_to_hbm [thread:$0]  (%p772_p7), %s565_s24, 1024, %s567_s22, [#allocation5], %s863_s25, %s863_s25, %s864_s26  }
 0x132 PF: > { %p773_p8 = scmp.ge.s32.totalorder %s859_s14, 2  ;;  %p774_p9 = scmp.eq.s32.totalorder %s641_s16, 1 }
 0x134   : > { %p769_p10 = pnand %p774_p9, %p773_p8 }
 0x136   : > { %p770_p11 = pneg %p769_p10 }
 0x138   : > { %846 = dma.done.wait (%p770_p11), [#allocation5], 1024  }
 0x139   : > { %848 = vsyncadd (%p770_p11), [#allocation5], 4294966272  ;;  %s16_s14 = sadd.s32 1, %s859_s14   ;;  %s1109_s12 = smov %s855_s13 }
 0x13a   : > { %p13_p12 = scmp.ge.s32.totalorder %s16_s14, 4   ;;  %s1110_s13 = smov %s1112_s17 }
 0x13c   :  { %15 = sbr.rel (!%p13_p12) target bundleno = 3 (0x3), region = 79 }
 0x141   :  { %588 = vsyncpa [#allocation5], 1 }
 0x142   :  { %590 = vsyncpa [#allocation5 + $0x1], 1 }

</bundles_post_ra>
